<compile_context>
chip_gen: v7x
topology: tpu7x:2x2x1
jax: 0.10.0
libtpu: 0.0.40
codegen_flags: <defaults>
</compile_context>

<pallas_src>
import numpy as np
import jax
import jax.numpy as jnp
from jax.experimental import pallas as pl
from jax.experimental.pallas import tpu as pltpu


def _make_res_block_kernel(H, W):
    HW = H * W

    def kernel(x_ref, w0_ref, b0_ref, w1_ref, b1_ref, out_ref):
        # x_ref  : (R, HW)      packed activations (R = images_per_block * C)
        # w*_ref : (R, 9R)      folded weight slab, K axis = [tap][image][c_in]
        # b*_ref : (R, 1)
        # out_ref: (R, HW)
        x = x_ref[...]                                     # (R, HW) f32

        # Boundary masks, built once per invocation from a lane iota (a few VPU
        # ops on 2-vreg operands).
        p = jax.lax.broadcasted_iota(jnp.int32, (1, HW), 1)
        col = p % W
        keep_l = (col != (W - 1)).astype(jnp.float32)   # source mask for kw=0 taps
        keep_r = (col != 0).astype(jnp.float32)         # source mask for kw=2 taps
        keep_top = (p >= W).astype(jnp.float32)         # output mask for kh=0 taps
        keep_bot = (p < (HW - W)).astype(jnp.float32)   # output mask for kh=2 taps

        def conv3x3(v, w_ref, b_ref):
            # v: (R, HW) f32 activation -> conv(v) + bias as (R, HW) f32.
            # Column wrap handled by pre-masked sources (applied once per conv).
            srcs = (v * keep_l, v, v * keep_r)
            taps = []
            for kh in range(3):
                for kw in range(3):
                    # tap (kh, kw) reads flat pixel q + d, d = (kh-1)*W + (kw-1)
                    d = (kh - 1) * W + (kw - 1)
                    t = srcs[kw]
                    if d != 0:
                        # t[:, q] = src[:, (q + d) % HW]  (XLU lane rotation)
                        t = pltpu.roll(t, shift=(-d) % HW, axis=1)
                    if kh == 0:
                        t = t * keep_top    # zero rows that wrapped from the bottom
                    elif kh == 2:
                        t = t * keep_bot    # zero rows that wrapped from the top
                    taps.append(t)
            big = jnp.concatenate(taps, axis=0)            # (9R, HW), K = taps
            return jnp.dot(w_ref[...], big,
                           preferred_element_type=jnp.float32) + b_ref[...]

        h0 = conv3x3(jnp.maximum(x, 0.0), w0_ref, b0_ref)   # relu -> conv0 (+b0)
        h1 = conv3x3(jnp.maximum(h0, 0.0), w1_ref, b1_ref)  # relu -> conv1 (+b1)
        out_ref[...] = (h1 + x).astype(out_ref.dtype)       # + un-relu'd residual

    return kernel


def residual_block_nchw(x_nchw, w0_hwio, b0, w1_hwio, b1):
    """Fused Residual_Block forward.

    x_nchw : (N, C, H, W) float32 (PyTorch layout)
    w*_hwio: (3, 3, C, C) HWIO conv weights; b*: (C,)
    returns: (N, C, H, W) float32
    """
    N, C, H, W = x_nchw.shape
    HW = H * W

    # Pack enough images per block to fill the 8 vreg sublanes at small C.
    nb = max(1, 8 // C) if C < 8 else 1
    while N % nb:
        nb -= 1
    R = nb * C
    G = N // nb
    if G > 1 and (R % 8) != 0:
        nb, R, G = N, N * C, 1    # fall back to one fully packed block

    # Free, metadata-only reshape: NCHW memory order, no pad / transpose in HBM.
    x_flat = x_nchw.reshape(N * C, HW).astype(jnp.float32)

    # One-time weight relayout: per-tap (c_out, c_in), block-diagonal over the nb
    # packed images, flattened to an (R, 9R) slab with K = [tap][image][c_in].
    def slab(w_hwio):
        w_oi = jnp.transpose(w_hwio, (0, 1, 3, 2)).reshape(9, C, C).astype(jnp.float32)
        eye = jnp.eye(nb, dtype=jnp.float32)
        w_bd = jnp.einsum("tab,mn->tmanb", w_oi, eye).reshape(9, R, R)
        return jnp.transpose(w_bd, (1, 0, 2)).reshape(R, 9 * R)

    w0_s = slab(w0_hwio)
    w1_s = slab(w1_hwio)
    b0_p = jnp.tile(b0.astype(jnp.float32), nb).reshape(R, 1)
    b1_p = jnp.tile(b1.astype(jnp.float32), nb).reshape(R, 1)

    out_flat = pl.pallas_call(
        _make_res_block_kernel(H, W),
        out_shape=jax.ShapeDtypeStruct((N * C, HW), jnp.float32),
        grid=(G,),
        in_specs=[
            pl.BlockSpec((R, HW), lambda g: (g, 0)),
            pl.BlockSpec((R, 9 * R), lambda g: (0, 0)),
            pl.BlockSpec((R, 1), lambda g: (0, 0)),
            pl.BlockSpec((R, 9 * R), lambda g: (0, 0)),
            pl.BlockSpec((R, 1), lambda g: (0, 0)),
        ],
        out_specs=pl.BlockSpec((R, HW), lambda g: (g, 0)),
        compiler_params=pltpu.CompilerParams(
            dimension_semantics=("parallel",)),
    )(x_flat, w0_s, b0_p, w1_s, b1_p)

    return out_flat.reshape(N, C, H, W)


if __name__ == "__main__":
    N, C, H, W = 2, 4, 16, 16
    key = jax.random.PRNGKey(0)
    kx, k0, kb0, k1, kb1 = jax.random.split(key, 5)

    x = jax.random.normal(kx, (N, C, H, W), dtype=jnp.float32)

    # Deterministic init mimicking nn.Conv2d default (uniform +/- 1/sqrt(fan_in)),
    # stored in HWIO layout (kh, kw, cin, cout).
    fan_in = C * 3 * 3
    bound = float(1.0 / np.sqrt(fan_in))
    w0 = jax.random.uniform(k0, (3, 3, C, C), jnp.float32, -bound, bound)
    b0 = jax.random.uniform(kb0, (C,), jnp.float32, -bound, bound)
    w1 = jax.random.uniform(k1, (3, 3, C, C), jnp.float32, -bound, bound)
    b1 = jax.random.uniform(kb1, (C,), jnp.float32, -bound, bound)

    out = residual_block_nchw(x, w0, b0, w1, b1)
    jax.block_until_ready(out)

    # Pure-JAX reference of the PyTorch forward, directly in NCHW.
    def ref(xn):
        h = jax.nn.relu(xn)
        h = jax.lax.conv_general_dilated(
            h, w0, (1, 1), "SAME",
            dimension_numbers=("NCHW", "HWIO", "NCHW")) + b0.reshape(1, C, 1, 1)
        h = jax.nn.relu(h)
        h = jax.lax.conv_general_dilated(
            h, w1, (1, 1), "SAME",
            dimension_numbers=("NCHW", "HWIO", "NCHW")) + b1.reshape(1, C, 1, 1)
        return h + xn

    np.testing.assert_allclose(np.asarray(out), np.asarray(ref(x)),
                               rtol=1e-4, atol=1e-4)
    print("KERNEL_OK")
</pallas_src>

<mosaic_0001>
module attributes {stable_mosaic.version = 11 : i64} {
  func.func @kernel(%arg0: i32, %arg1: memref<8x256xf32, #tpu.memory_space<vmem>>, %arg2: memref<8x72xf32, #tpu.memory_space<vmem>>, %arg3: memref<8x1xf32, #tpu.memory_space<vmem>>, %arg4: memref<8x72xf32, #tpu.memory_space<vmem>>, %arg5: memref<8x1xf32, #tpu.memory_space<vmem>>, %arg6: memref<8x256xf32, #tpu.memory_space<vmem>>) attributes {dimension_semantics = [#tpu.dimension_semantics<parallel>], iteration_bounds = array<i64: 1>, scalar_prefetch = 0 : i64, scratch_operands = 0 : i64, tpu.core_type = #tpu.core_type<tc>, window_params = [{transform_indices = @transform_0, window_bounds = array<i64: 8, 256>}, {pipeline_mode = #tpu.pipeline_mode<synchronous>, transform_indices = @transform_1, window_bounds = array<i64: 8, 72>}, {pipeline_mode = #tpu.pipeline_mode<synchronous>, transform_indices = @transform_2, window_bounds = array<i64: 8, 1>}, {pipeline_mode = #tpu.pipeline_mode<synchronous>, transform_indices = @transform_3, window_bounds = array<i64: 8, 72>}, {pipeline_mode = #tpu.pipeline_mode<synchronous>, transform_indices = @transform_4, window_bounds = array<i64: 8, 1>}, {transform_indices = @transform_5, window_bounds = array<i64: 8, 256>}]} {
    %c0 = arith.constant 0 : index
    %c0_0 = arith.constant 0 : index
    %0 = vector.load %arg1[%c0, %c0_0] : memref<8x256xf32, #tpu.memory_space<vmem>>, vector<8x256xf32>
    %1 = tpu.iota {dimensions = array<i32: 1>} : vector<1x256xi32>
    %c16_i32 = arith.constant 16 : i32
    %c0_i32 = arith.constant 0 : i32
    %2 = arith.cmpi eq, %c16_i32, %c0_i32 : i32
    %c1_i32 = arith.constant 1 : i32
    %3 = arith.select %2, %c1_i32, %c16_i32 : i32
    %4 = vector.broadcast %3 : i32 to vector<1x256xi32>
    %5 = arith.remsi %1, %4 : vector<1x256xi32>
    %c0_i32_1 = arith.constant 0 : i32
    %6 = vector.broadcast %c0_i32_1 : i32 to vector<1x256xi32>
    %7 = arith.cmpi ne, %5, %6 : vector<1x256xi32>
    %c0_i32_2 = arith.constant 0 : i32
    %8 = vector.broadcast %c0_i32_2 : i32 to vector<1x256xi32>
    %9 = arith.cmpi slt, %5, %8 : vector<1x256xi32>
    %c0_i32_3 = arith.constant 0 : i32
    %10 = arith.cmpi slt, %3, %c0_i32_3 : i32
    %11 = vector.broadcast %10 : i1 to vector<1x256xi1>
    %12 = vector.broadcast %11 : vector<1x256xi1> to vector<1x256xi1>
    %13 = arith.xori %9, %12 : vector<1x256xi1>
    %14 = arith.andi %13, %7 : vector<1x256xi1>
    %15 = vector.broadcast %3 : i32 to vector<1x256xi32>
    %16 = arith.addi %5, %15 : vector<1x256xi32>
    %17 = arith.select %14, %16, %5 : vector<1x256xi1>, vector<1x256xi32>
    %c15_i32 = arith.constant 15 : i32
    %18 = vector.broadcast %c15_i32 : i32 to vector<1x256xi32>
    %19 = arith.cmpi ne, %17, %18 : vector<1x256xi32>
    %20 = arith.extui %19 : vector<1x256xi1> to vector<1x256xi32>
    %21 = arith.sitofp %20 : vector<1x256xi32> to vector<1x256xf32>
    %c0_i32_4 = arith.constant 0 : i32
    %22 = vector.broadcast %c0_i32_4 : i32 to vector<1x256xi32>
    %23 = arith.cmpi ne, %17, %22 : vector<1x256xi32>
    %24 = arith.extui %23 : vector<1x256xi1> to vector<1x256xi32>
    %25 = arith.sitofp %24 : vector<1x256xi32> to vector<1x256xf32>
    %c16_i32_5 = arith.constant 16 : i32
    %26 = vector.broadcast %c16_i32_5 : i32 to vector<1x256xi32>
    %27 = arith.cmpi sge, %1, %26 : vector<1x256xi32>
    %28 = arith.extui %27 : vector<1x256xi1> to vector<1x256xi32>
    %29 = arith.sitofp %28 : vector<1x256xi32> to vector<1x256xf32>
    %c240_i32 = arith.constant 240 : i32
    %30 = vector.broadcast %c240_i32 : i32 to vector<1x256xi32>
    %31 = arith.cmpi slt, %1, %30 : vector<1x256xi32>
    %32 = arith.extui %31 : vector<1x256xi1> to vector<1x256xi32>
    %33 = arith.sitofp %32 : vector<1x256xi32> to vector<1x256xf32>
    %cst = arith.constant 0.000000e+00 : f32
    %34 = vector.broadcast %cst : f32 to vector<8x256xf32>
    %35 = arith.maximumf %0, %34 : vector<8x256xf32>
    %36 = vector.broadcast %21 : vector<1x256xf32> to vector<8x256xf32>
    %37 = arith.mulf %35, %36 : vector<8x256xf32>
    %38 = vector.broadcast %25 : vector<1x256xf32> to vector<8x256xf32>
    %39 = arith.mulf %35, %38 : vector<8x256xf32>
    %c17_i32 = arith.constant 17 : i32
    %40 = tpu.dynamic_rotate %37 by %c17_i32 dim 1 : vector<8x256xf32>, i32 -> vector<8x256xf32>
    %41 = vector.broadcast %29 : vector<1x256xf32> to vector<8x256xf32>
    %42 = arith.mulf %40, %41 : vector<8x256xf32>
    %c16_i32_6 = arith.constant 16 : i32
    %43 = tpu.dynamic_rotate %35 by %c16_i32_6 dim 1 : vector<8x256xf32>, i32 -> vector<8x256xf32>
    %44 = vector.broadcast %29 : vector<1x256xf32> to vector<8x256xf32>
    %45 = arith.mulf %43, %44 : vector<8x256xf32>
    %c15_i32_7 = arith.constant 15 : i32
    %46 = tpu.dynamic_rotate %39 by %c15_i32_7 dim 1 : vector<8x256xf32>, i32 -> vector<8x256xf32>
    %47 = vector.broadcast %29 : vector<1x256xf32> to vector<8x256xf32>
    %48 = arith.mulf %46, %47 : vector<8x256xf32>
    %c1_i32_8 = arith.constant 1 : i32
    %49 = tpu.dynamic_rotate %37 by %c1_i32_8 dim 1 : vector<8x256xf32>, i32 -> vector<8x256xf32>
    %c255_i32 = arith.constant 255 : i32
    %50 = tpu.dynamic_rotate %39 by %c255_i32 dim 1 : vector<8x256xf32>, i32 -> vector<8x256xf32>
    %c241_i32 = arith.constant 241 : i32
    %51 = tpu.dynamic_rotate %37 by %c241_i32 dim 1 : vector<8x256xf32>, i32 -> vector<8x256xf32>
    %52 = vector.broadcast %33 : vector<1x256xf32> to vector<8x256xf32>
    %53 = arith.mulf %51, %52 : vector<8x256xf32>
    %c240_i32_9 = arith.constant 240 : i32
    %54 = tpu.dynamic_rotate %35 by %c240_i32_9 dim 1 : vector<8x256xf32>, i32 -> vector<8x256xf32>
    %55 = vector.broadcast %33 : vector<1x256xf32> to vector<8x256xf32>
    %56 = arith.mulf %54, %55 : vector<8x256xf32>
    %c239_i32 = arith.constant 239 : i32
    %57 = tpu.dynamic_rotate %39 by %c239_i32 dim 1 : vector<8x256xf32>, i32 -> vector<8x256xf32>
    %58 = vector.broadcast %33 : vector<1x256xf32> to vector<8x256xf32>
    %59 = arith.mulf %57, %58 : vector<8x256xf32>
    %60 = tpu.concatenate %42, %45, %48, %49, %35, %50, %53, %56, %59 in 0 : vector<8x256xf32>, vector<8x256xf32>, vector<8x256xf32>, vector<8x256xf32>, vector<8x256xf32>, vector<8x256xf32>, vector<8x256xf32>, vector<8x256xf32>, vector<8x256xf32> -> vector<72x256xf32>
    %c0_10 = arith.constant 0 : index
    %c0_11 = arith.constant 0 : index
    %61 = vector.load %arg2[%c0_10, %c0_11] : memref<8x72xf32, #tpu.memory_space<vmem>>, vector<8x72xf32>
    %cst_12 = arith.constant dense<0.000000e+00> : vector<8x256xf32>
    %62 = tpu.matmul %61, %60, %cst_12 {dimension_numbers = #tpu.dot_dimension_numbers<[1], [0], [0], [1], [0, 0, 1, 1], [], []>} : vector<8x72xf32>, vector<72x256xf32>, vector<8x256xf32> -> vector<8x256xf32>
    %c0_13 = arith.constant 0 : index
    %c0_14 = arith.constant 0 : index
    %63 = vector.load %arg3[%c0_13, %c0_14] : memref<8x1xf32, #tpu.memory_space<vmem>>, vector<8x1xf32>
    %64 = vector.broadcast %63 : vector<8x1xf32> to vector<8x256xf32>
    %65 = arith.addf %62, %64 : vector<8x256xf32>
    %cst_15 = arith.constant 0.000000e+00 : f32
    %66 = vector.broadcast %cst_15 : f32 to vector<8x256xf32>
    %67 = arith.maximumf %65, %66 : vector<8x256xf32>
    %68 = vector.broadcast %21 : vector<1x256xf32> to vector<8x256xf32>
    %69 = arith.mulf %67, %68 : vector<8x256xf32>
    %70 = vector.broadcast %25 : vector<1x256xf32> to vector<8x256xf32>
    %71 = arith.mulf %67, %70 : vector<8x256xf32>
    %c17_i32_16 = arith.constant 17 : i32
    %72 = tpu.dynamic_rotate %69 by %c17_i32_16 dim 1 : vector<8x256xf32>, i32 -> vector<8x256xf32>
    %73 = vector.broadcast %29 : vector<1x256xf32> to vector<8x256xf32>
    %74 = arith.mulf %72, %73 : vector<8x256xf32>
    %c16_i32_17 = arith.constant 16 : i32
    %75 = tpu.dynamic_rotate %67 by %c16_i32_17 dim 1 : vector<8x256xf32>, i32 -> vector<8x256xf32>
    %76 = vector.broadcast %29 : vector<1x256xf32> to vector<8x256xf32>
    %77 = arith.mulf %75, %76 : vector<8x256xf32>
    %c15_i32_18 = arith.constant 15 : i32
    %78 = tpu.dynamic_rotate %71 by %c15_i32_18 dim 1 : vector<8x256xf32>, i32 -> vector<8x256xf32>
    %79 = vector.broadcast %29 : vector<1x256xf32> to vector<8x256xf32>
    %80 = arith.mulf %78, %79 : vector<8x256xf32>
    %c1_i32_19 = arith.constant 1 : i32
    %81 = tpu.dynamic_rotate %69 by %c1_i32_19 dim 1 : vector<8x256xf32>, i32 -> vector<8x256xf32>
    %c255_i32_20 = arith.constant 255 : i32
    %82 = tpu.dynamic_rotate %71 by %c255_i32_20 dim 1 : vector<8x256xf32>, i32 -> vector<8x256xf32>
    %c241_i32_21 = arith.constant 241 : i32
    %83 = tpu.dynamic_rotate %69 by %c241_i32_21 dim 1 : vector<8x256xf32>, i32 -> vector<8x256xf32>
    %84 = vector.broadcast %33 : vector<1x256xf32> to vector<8x256xf32>
    %85 = arith.mulf %83, %84 : vector<8x256xf32>
    %c240_i32_22 = arith.constant 240 : i32
    %86 = tpu.dynamic_rotate %67 by %c240_i32_22 dim 1 : vector<8x256xf32>, i32 -> vector<8x256xf32>
    %87 = vector.broadcast %33 : vector<1x256xf32> to vector<8x256xf32>
    %88 = arith.mulf %86, %87 : vector<8x256xf32>
    %c239_i32_23 = arith.constant 239 : i32
    %89 = tpu.dynamic_rotate %71 by %c239_i32_23 dim 1 : vector<8x256xf32>, i32 -> vector<8x256xf32>
    %90 = vector.broadcast %33 : vector<1x256xf32> to vector<8x256xf32>
    %91 = arith.mulf %89, %90 : vector<8x256xf32>
    %92 = tpu.concatenate %74, %77, %80, %81, %67, %82, %85, %88, %91 in 0 : vector<8x256xf32>, vector<8x256xf32>, vector<8x256xf32>, vector<8x256xf32>, vector<8x256xf32>, vector<8x256xf32>, vector<8x256xf32>, vector<8x256xf32>, vector<8x256xf32> -> vector<72x256xf32>
    %c0_24 = arith.constant 0 : index
    %c0_25 = arith.constant 0 : index
    %93 = vector.load %arg4[%c0_24, %c0_25] : memref<8x72xf32, #tpu.memory_space<vmem>>, vector<8x72xf32>
    %cst_26 = arith.constant dense<0.000000e+00> : vector<8x256xf32>
    %94 = tpu.matmul %93, %92, %cst_26 {dimension_numbers = #tpu.dot_dimension_numbers<[1], [0], [0], [1], [0, 0, 1, 1], [], []>} : vector<8x72xf32>, vector<72x256xf32>, vector<8x256xf32> -> vector<8x256xf32>
    %c0_27 = arith.constant 0 : index
    %c0_28 = arith.constant 0 : index
    %95 = vector.load %arg5[%c0_27, %c0_28] : memref<8x1xf32, #tpu.memory_space<vmem>>, vector<8x1xf32>
    %96 = vector.broadcast %95 : vector<8x1xf32> to vector<8x256xf32>
    %97 = arith.addf %94, %96 : vector<8x256xf32>
    %98 = arith.addf %97, %0 : vector<8x256xf32>
    %c0_29 = arith.constant 0 : index
    %c0_30 = arith.constant 0 : index
    %99 = vector.load %arg6[%c0_29, %c0_30] : memref<8x256xf32, #tpu.memory_space<vmem>>, vector<8x256xf32>
    tpu.vector_store %arg6[%c0_29, %c0_30], %98 {strides = array<i32>} : memref<8x256xf32, #tpu.memory_space<vmem>>, vector<8x256xf32>,
    return
  }
  func.func @transform_0(%arg0: i32) -> (i32, i32) {
    %c0_i32 = arith.constant 0 : i32
    %c0_i32_0 = arith.constant 0 : i32
    return %arg0, %c0_i32 : i32, i32
  }
  func.func @transform_1(%arg0: i32) -> (i32, i32) {
    %c0_i32 = arith.constant 0 : i32
    %c0_i32_0 = arith.constant 0 : i32
    %c0_i32_1 = arith.constant 0 : i32
    return %c0_i32, %c0_i32_0 : i32, i32
  }
  func.func @transform_2(%arg0: i32) -> (i32, i32) {
    %c0_i32 = arith.constant 0 : i32
    %c0_i32_0 = arith.constant 0 : i32
    %c0_i32_1 = arith.constant 0 : i32
    return %c0_i32, %c0_i32_0 : i32, i32
  }
  func.func @transform_3(%arg0: i32) -> (i32, i32) {
    %c0_i32 = arith.constant 0 : i32
    %c0_i32_0 = arith.constant 0 : i32
    %c0_i32_1 = arith.constant 0 : i32
    return %c0_i32, %c0_i32_0 : i32, i32
  }
  func.func @transform_4(%arg0: i32) -> (i32, i32) {
    %c0_i32 = arith.constant 0 : i32
    %c0_i32_0 = arith.constant 0 : i32
    %c0_i32_1 = arith.constant 0 : i32
    return %c0_i32, %c0_i32_0 : i32, i32
  }
  func.func @transform_5(%arg0: i32) -> (i32, i32) {
    %c0_i32 = arith.constant 0 : i32
    %c0_i32_0 = arith.constant 0 : i32
    return %arg0, %c0_i32 : i32, i32
  }
}

</mosaic_0001>

<bundles_post_ra>
// kernel: tpu_custom_call.1
= control target key start
LH: loop header
LB: loop body
LE: loop exit
PB: predicated region body
PF: predicated region fallthrough
CT: control target
= control target key end

     0   :  { %10 = vsyncpa [#allocation3], 0  ;;  %s778_s0 = inlined_call_operand.vmem [shape: f32[8,256], index: 0, kind: input, shape index: {}]   ;;  %s779_s1 = inlined_call_operand.hbm [shape: f32[8,72], index: 1, kind: input, shape index: {}]   ;;  %s780_s2 = inlined_call_operand.vmem [shape: f32[8,1], index: 2, kind: input, shape index: {}]   ;;  %s781_s3 = inlined_call_operand.vmem [shape: f32[8,72], index: 3, kind: input, shape index: {}]   ;;  %s782_s4 = inlined_call_operand.vmem [shape: f32[8,1], index: 4, kind: input, shape index: {}]   ;;  %s783_s5 = inlined_call_operand.hbm [shape: f32[8,256], index: 5, kind: output, shape index: {}]  }
   0x1   :  { %11 = vsyncpa [#allocation4], 0  ;;  %s529_s18 = smov [#allocation2]   ;;  %s481_s22 = scalar_lea.hbm %s779_s1, 128 }
   0x2   :  { %s20_s19 = sshll.u32 %s529_s18, 4  ;;  %p482_p0 = scmp.ne.s32.totalorder %s779_s1, %s481_s22  ;;  %s21_s19 = int_to_ptr.vmem [resolvable:$true] %s20_s19 }
   0x3   :  { %p485_p1 = scmp.lt.u32.totalorder %s481_s22, %s779_s1 }
   0x5   :  { %p487_p2 = pnand %p485_p1, %p482_p0 }
   0x7   :  { %490 = shalt.err (!%p487_p2)
}
   0x8   :  { %s491_s27 = scalar_lea.vmem %s21_s19, 128  ;;  %p496_p4 = scmp.lt.s32.totalorder %s21_s19, %s21_s19 }
   0x9   :  { %p492_p3 = scmp.ne.s32.totalorder %s21_s19, %s491_s27  ;;  %p497_p5 = scmp.lt.s32.totalorder %s491_s27, %s491_s27 }
   0xb   :  { %p498_p6 = por %p497_p5, %p496_p4 }
   0xd   :  { %p499_p7 = pnand %p498_p6, %p492_p3 }
   0xf   :  { %502 = shalt.err (!%p499_p7)
}
  0x10   :  { %23 = dma.hbm_to_vmem [thread:$0]  %s779_s1, 128, %s21_s19, [#allocation3]  }
  0x11   :  { %525 = dma.done.wait [#allocation3], 128  }
  0x12   :  { %526 = vsyncadd [#allocation3], 4294967168  ;;  %v35_v0 = vlaneseq  ;;  %v530_v1 = vmov 0.0   ;;  %v593_v7 = vld [vmem:[%s778_s0] sm:$0xff]  ;;  %v600_v9 = vld [vmem:[%s778_s0 + $0x8] sm:$0xff]  ;;  %s531_s8 = smov 16  }
  0x13   :  { %235 = vmatprep.mubr.f32.mxu0 %v530_v1  ;;  %382 = vmatprep.mubr.f32.mxu1 %v530_v1  ;;  %v603_v10 = vmax.f32 %v593_v7, 0.0  ;;  %v606_v11 = vmax.f32 %v600_v9, 0.0  ;;  %s532_s0 = smov 17   ;;  %s533_s9 = smov 15   ;;  %v538_v22 = vmov 0   ;;  %v161_v23 = vld [vmem:[%s780_s2] sm:$0xff] }
  0x14   :  { %v583_v2 = vand.u32 127, %v35_v0  ;;  %s534_s10 = smov 127   ;;  %s535_s11 = smov 1   ;;  %470 = vset.pattern.permute.xlu0 %v538_v22  ;;  %vm167_vm14 = vcmask 588800  }
  0x15   :  { %101 = vrot.lane.b32.xlu1 %v603_v10, %s531_s8  ;;  %s536_s12 = smov 113   ;;  %s537_s13 = smov 112  }
  0x16   :  { %v42_v3 = vand.u32 15, %v583_v2  ;;  %v37_v4 = vadd.s32 128, %v583_v2  ;;  %vm74_vm0 = vcmp.ge.s32.totalorder %v583_v2, 16  ;;  %s539_s14 = smov 111   ;;  %vm105_vm6 = vcmp.lt.s32.totalorder %v583_v2, 16  ;;  %s540_s19 = smov [#allocation5]  }
  0x17   :  { %v588_v5 = vsel %vm74_vm0, 1.0, %v530_v1  ;;  %vm96_vm7 = vcmp.lt.s32.totalorder %v583_v2, 17  ;;  %vm114_vm8 = vcmp.lt.s32.totalorder %v583_v2, 15  ;;  %vm123_vm9 = vcmp.lt.s32.totalorder %v583_v2, 1  ;;  %s399_s20 = sshll.u32 %s540_s19, 4  ;;  %s400_s20 = int_to_ptr.vmem [resolvable:$true] %s399_s20 }
  0x18   :  { %vm62_vm1 = vcmp.ne.s32.totalorder %v42_v3, 15  ;;  %v49_v6 = vand.u32 15, %v37_v4  ;;  %vm81_vm4 = vcmp.lt.s32.totalorder %v37_v4, 240  ;;  %vm68_vm5 = vcmp.ne.s32.totalorder %v42_v3, 0  ;;  %p508_p9 = scmp.lt.s32.totalorder %s400_s20, %s400_s20 }
  0x19   :  { %v595_v8 = vsel %vm62_vm1, 1.0, %v530_v1  ;;  %v619_v16 = vsel %vm81_vm4, 1.0, %v530_v1  ;;  %v621_v17 = vsel %vm68_vm5, 1.0, %v530_v1  ;;  %103 = vrot.lane.b32.xlu1 %v606_v11, %s531_s8  ;;  %vm130_vm10 = vcmp.lt.s32.totalorder %v583_v2, 127 }
  0x1a   :  { %vm63_vm2 = vcmp.ne.s32.totalorder %v49_v6, 15  ;;  %vm69_vm3 = vcmp.ne.s32.totalorder %v49_v6, 0  ;;  %v88_v13 = vmul.f32 %v595_v8, %v603_v10  ;;  %v90_v19 = vmul.f32 %v621_v17, %v603_v10 }
  0x1b   :  { %v608_v12 = vsel %vm63_vm2, 1.0, %v530_v1  ;;  %v614_v14 = vsel %vm69_vm3, 1.0, %v530_v1  ;;  %vm137_vm11 = vcmp.lt.s32.totalorder %v583_v2, 113  ;;  %vm146_vm12 = vcmp.lt.s32.totalorder %v583_v2, 112 }
  0x1c   :  { %92 = vrot.lane.b32.xlu0 %v88_v13, %s532_s0  ;;  %v89_v15 = vmul.f32 %v608_v12, %v606_v11  ;;  %v91_v18 = vmul.f32 %v614_v14, %v606_v11  ;;  %vm155_vm13 = vcmp.lt.s32.totalorder %v583_v2, 111 }
  0x1e   :  { %112 = vrot.lane.b32.xlu1 %v91_v18, %s533_s9  ;;  %v465_v20 = vpack.i.bf16 %v91_v18, %v90_v19  ;;  %v460_v21 = vpack.i.bf16 %v89_v15, %v88_v13 }
  0x20   :  { %94 = vrot.lane.b32.xlu0 %v89_v15, %s532_s0 }
  0x22   :  { %466 = vrot.lane.b32.xlu1 %v465_v20, %s534_s10 }
  0x24   :  { %110 = vrot.lane.b32.xlu0 %v90_v19, %s533_s9 }
  0x26   :  { %135 = vrot.lane.b32.xlu1 %v89_v15, %s536_s12 }
  0x28   :  { %461 = vrot.lane.b32.xlu0 %v460_v21, %s535_s11 }
  0x2a   :  { %144 = vrot.lane.b32.xlu1 %v606_v11, %s537_s13 }
  0x2c   :  { %133 = vrot.lane.b32.xlu0 %v88_v13, %s536_s12  ;;  %v160_v13 = vld [vmem:[#allocation2] sm:$0xff] }
  0x2e   :  { %153 = vrot.lane.b32.xlu1 %v91_v18, %s539_s14 }
  0x30   :  { %142 = vrot.lane.b32.xlu0 %v603_v10, %s537_s13 }
  0x34   :  { %151 = vrot.lane.b32.xlu0 %v90_v19, %s539_s14 }
  0x38   :  { %164 = vperm.xlu0 %470, %v161_v23  }
  0x87   :  { %v102_v24 = vpop.permute.xlu1 %101 }
  0x8b   :  { %v104_v26 = vpop.permute.xlu1 %103 }
  0x8c   :  { %v107_v27 = vsel %vm105_vm6, %v104_v26, %v102_v24  ;;  %v106_v31 = vsel %vm105_vm6, %v102_v24, %v104_v26 }
  0x8d   :  { %v108_v32 = vmul.f32 %v588_v5, %v107_v27 }
  0x8e   :  { %v93_v25 = vpop.permute.xlu0 %92 }
  0x90   :  { %v113_v34 = vpop.permute.xlu1 %112 }
  0x92   :  { %v95_v28 = vpop.permute.xlu0 %94 }
  0x93   :  { %v98_v29 = vsel %vm96_vm7, %v95_v28, %v93_v25  ;;  %v97_v30 = vsel %vm96_vm7, %v93_v25, %v95_v28 }
  0x94   :  { %v99_v33 = vmul.f32 %v588_v5, %v98_v29  ;;  %v416_v35 = vpack.c.bf16 %v106_v31, %v97_v30  ;;  %v467_v38 = vpop.permute.xlu1 %466 }
  0x95   :  { %v469_v40 = vunpack.i.h.bf16 %v467_v38  ;;  %v468_v41 = vunpack.i.l.bf16 %v467_v38 }
  0x96   :  { %417 = vmatprep.subr.bf16.mxu0 %v416_v35  ;;  %v111_v36 = vpop.permute.xlu0 %110  ;;  %v418_v37 = vpack.c.bf16 %v108_v32, %v99_v33 }
  0x97   :  { %v116_v39 = vsel %vm114_vm8, %v113_v34, %v111_v36  ;;  %v115_v47 = vsel %vm114_vm8, %v111_v36, %v113_v34  ;;  %v132_v50 = vsel %vm130_vm10, %v469_v40, %v468_v41  ;;  %v131_v56 = vsel %vm130_vm10, %v468_v41, %v469_v40 }
  0x98   :  { %419 = vmatpush1.bf16.msra.mxu0 %v418_v37  ;;  %v117_v45 = vmul.f32 %v588_v5, %v116_v39  ;;  %v136_v46 = vpop.permute.xlu1 %135  ;;  %v424_v55 = vpack.c.bf16 %v132_v50, %v606_v11  ;;  %v426_v60 = vpack.c.bf16 %v131_v56, %v603_v10 }
  0x9a   :  { %v462_v42 = vpop.permute.xlu0 %461 }
  0x9b   :  { %v464_v43 = vunpack.i.h.bf16 %v462_v42  ;;  %v463_v44 = vunpack.i.l.bf16 %v462_v42 }
  0x9c   :  { %v145_v54 = vpop.permute.xlu1 %144 }
  0x9d   :  { %v124_v48 = vsel %vm123_vm9, %v463_v44, %v464_v43  ;;  %v125_v49 = vsel %vm123_vm9, %v464_v43, %v463_v44 }
  0x9e   :  { %v134_v51 = vpop.permute.xlu0 %133  ;;  %v420_v52 = vpack.c.bf16 %v124_v48, %v115_v47  ;;  %v422_v53 = vpack.c.bf16 %v125_v49, %v117_v45 }
  0x9f   :  { %v139_v57 = vsel %vm137_vm11, %v136_v46, %v134_v51  ;;  %v138_v1 = vsel %vm137_vm11, %v134_v51, %v136_v46 }
  0xa0   :  { %421 = vmatprep.subr.bf16.mxu0 %v420_v52  ;;  %v141_v61 = vmul.f32 %v619_v16, %v139_v57  ;;  %v154_v0 = vpop.permute.xlu1 %153 }
  0xa1   :  { %423 = vmatpush1.bf16.msra.mxu0 %v422_v53 }
  0xa2   :  { %v143_v58 = vpop.permute.xlu0 %142  ;;  %425 = vmatprep.subr.bf16.mxu0 %v424_v55 }
  0xa3   :  { %v148_v59 = vsel %vm146_vm12, %v145_v54, %v143_v58  ;;  %v147_v62 = vsel %vm146_vm12, %v143_v58, %v145_v54 }
  0xa4   :  { %v150_v63 = vmul.f32 %v619_v16, %v148_v59  ;;  %v430_v6 = vpack.c.bf16 %v147_v62, %v138_v1 }
  0xa5   :  { %427 = vmatpush1.bf16.msra.mxu0 %v426_v60 }
  0xa6   :  { %v152_v3 = vpop.permute.xlu0 %151  ;;  %v428_v4 = vpack.c.bf16 %v150_v63, %v141_v61 }
  0xa7   :  { %v157_v10 = vsel %vm155_vm13, %v154_v0, %v152_v3  ;;  %v156_v15 = vsel %vm155_vm13, %v152_v3, %v154_v0 }
  0xa8   :  { %v159_v11 = vmul.f32 %v619_v16, %v157_v10  ;;  %429 = vmatprep.subr.bf16.mxu0 %v428_v4 }
  0xa9   :  { %431 = vmatpush1.bf16.msra.mxu0 %v430_v6 }
  0xaa   :  { %187 = vmatprep.subr.mxu0 %v159_v11 }
  0xad   :  { %188 = vmatpush1.msra.mxu0 %v156_v15 }
  0xae   :  { %414 = vmatmul.mubr.msk.f32.vlgmr.msra.gmra.mrb[0].mxu0 %vm167_vm14, %v160_v13 }
  0xb7   :  { %v165_v18 = vpop.permute.xlu0 %164 }
 0x181   :  { %v237_v19 = vpop.f32.mrb[0].mxu0 }
 0x182   :  { %v238_v20 = vadd.f32 %v237_v19, %v165_v18  ;;  %v239_v21 = vpop.f32.mrb[1].mxu0  ;;  %v308_v19 = vld [vmem:[%s781_s3] sm:$0xff]  ;;  %s503_s3 = scalar_lea.vmem %s400_s20, 256 }
 0x183   :  { %v240_v22 = vadd.f32 %v239_v21, %v165_v18  ;;  %p504_p8 = scmp.ne.s32.totalorder %s400_s20, %s503_s3  ;;  %p509_p10 = scmp.lt.s32.totalorder %s503_s3, %s503_s3 }
 0x184   :  { %v694_v23 = vmax.f32 %v238_v20, 0.0 }
 0x185   :  { %v243_v24 = vmax.f32 %v240_v22, 0.0  ;;  %p510_p11 = por %p509_p10, %p508_p9 }
 0x186   :  { %256 = vrot.lane.b32.xlu0 %v694_v23, %s531_s8  ;;  %v246_v25 = vmul.f32 %v621_v17, %v694_v23  ;;  %v244_v26 = vmul.f32 %v595_v8, %v694_v23  ;;  %v309_v8 = vld [vmem:[%s782_s4] sm:$0xff] }
 0x187   :  { %258 = vrot.lane.b32.xlu1 %v243_v24, %s531_s8  ;;  %v245_v27 = vmul.f32 %v608_v12, %v243_v24  ;;  %v247_v29 = vmul.f32 %v614_v14, %v243_v24  ;;  %p511_p12 = pnand %p510_p11, %p504_p8 }
 0x189   :  { %v471_v28 = vpack.i.bf16 %v245_v27, %v244_v26  ;;  %v476_v17 = vpack.i.bf16 %v247_v29, %v246_v25 }
 0x18a   :  { %264 = vrot.lane.b32.xlu0 %v246_v25, %s533_s9 }
 0x18b   :  { %248 = vrot.lane.b32.xlu1 %v244_v26, %s532_s0 }
 0x18e   :  { %472 = vrot.lane.b32.xlu0 %v471_v28, %s535_s11 }
 0x18f   :  { %250 = vrot.lane.b32.xlu1 %v245_v27, %s532_s0 }
 0x192   :  { %284 = vrot.lane.b32.xlu0 %v244_v26, %s536_s12 }
 0x193   :  { %266 = vrot.lane.b32.xlu1 %v247_v29, %s533_s9 }
 0x196   :  { %292 = vrot.lane.b32.xlu0 %v694_v23, %s537_s13 }
 0x197   :  { %477 = vrot.lane.b32.xlu1 %v476_v17, %s534_s10 }
 0x19a   :  { %300 = vrot.lane.b32.xlu0 %v246_v25, %s539_s14 }
 0x19b   :  { %286 = vrot.lane.b32.xlu1 %v245_v27, %s536_s12 }
 0x19e   :  { %312 = vperm.xlu0 %470, %v309_v8  }
 0x19f   :  { %294 = vrot.lane.b32.xlu1 %v243_v24, %s537_s13 }
 0x1a3   :  { %302 = vrot.lane.b32.xlu1 %v247_v29, %s539_s14 }
 0x1f8   :  { %v257_v12 = vpop.permute.xlu0 %256 }
 0x1f9   :  { %v259_v14 = vpop.permute.xlu1 %258 }
 0x1fa   :  { %v261_v32 = vsel %vm105_vm6, %v259_v14, %v257_v12  ;;  %v260_v35 = vsel %vm105_vm6, %v257_v12, %v259_v14 }
 0x1fb   :  { %v262_v40 = vmul.f32 %v588_v5, %v261_v32 }
 0x1fc   :  { %v265_v30 = vpop.permute.xlu0 %264 }
 0x1fd   :  { %v249_v31 = vpop.permute.xlu1 %248 }
 0x200   :  { %v473_v33 = vpop.permute.xlu0 %472 }
 0x201   :  { %v251_v34 = vpop.permute.xlu1 %250  ;;  %v475_v36 = vunpack.i.h.bf16 %v473_v33  ;;  %v474_v37 = vunpack.i.l.bf16 %v473_v33 }
 0x202   :  { %v253_v38 = vsel %vm96_vm7, %v251_v34, %v249_v31  ;;  %v252_v39 = vsel %vm96_vm7, %v249_v31, %v251_v34 }
 0x203   :  { %v254_v41 = vmul.f32 %v588_v5, %v253_v38  ;;  %v432_v42 = vpack.c.bf16 %v260_v35, %v252_v39  ;;  %v276_v45 = vsel %vm123_vm9, %v474_v37, %v475_v36  ;;  %v277_v50 = vsel %vm123_vm9, %v475_v36, %v474_v37 }
 0x204   :  { %v285_v51 = vpop.permute.xlu0 %284 }
 0x205   :  { %433 = vmatprep.subr.bf16.mxu1 %v432_v42  ;;  %v267_v43 = vpop.permute.xlu1 %266  ;;  %v434_v44 = vpack.c.bf16 %v262_v40, %v254_v41 }
 0x206   :  { %v268_v46 = vsel %vm114_vm8, %v265_v30, %v267_v43  ;;  %v269_v47 = vsel %vm114_vm8, %v267_v43, %v265_v30 }
 0x207   :  { %v270_v48 = vmul.f32 %v588_v5, %v269_v47  ;;  %v436_v49 = vpack.c.bf16 %v276_v45, %v268_v46  ;;  %435 = vmatpush1.bf16.msra.mxu1 %v434_v44 }
 0x208   :  { %v293_v60 = vpop.permute.xlu0 %292 }
 0x209   :  { %437 = vmatprep.subr.bf16.mxu1 %v436_v49  ;;  %v478_v52 = vpop.permute.xlu1 %477  ;;  %v438_v53 = vpack.c.bf16 %v277_v50, %v270_v48 }
 0x20a   :  { %v480_v54 = vunpack.i.h.bf16 %v478_v52  ;;  %v479_v55 = vunpack.i.l.bf16 %v478_v52 }
 0x20b   :  { %439 = vmatpush1.bf16.msra.mxu1 %v438_v53 }
 0x20c   :  { %v283_v56 = vsel %vm130_vm10, %v480_v54, %v479_v55  ;;  %v282_v57 = vsel %vm130_vm10, %v479_v55, %v480_v54  ;;  %v301_v4 = vpop.permute.xlu0 %300 }
 0x20d   :  { %v287_v58 = vpop.permute.xlu1 %286  ;;  %v440_v5 = vpack.c.bf16 %v283_v56, %v243_v24  ;;  %v442_v59 = vpack.c.bf16 %v282_v57, %v694_v23 }
 0x20e   :  { %v289_v61 = vsel %vm137_vm11, %v287_v58, %v285_v51  ;;  %v288_v6 = vsel %vm137_vm11, %v285_v51, %v287_v58 }
 0x20f   :  { %441 = vmatprep.subr.bf16.mxu1 %v440_v5  ;;  %v291_v0 = vmul.f32 %v619_v16, %v289_v61 }
 0x210   :  { %443 = vmatpush1.bf16.msra.mxu1 %v442_v59 }
 0x211   :  { %v295_v62 = vpop.permute.xlu1 %294 }
 0x212   :  { %v297_v63 = vsel %vm146_vm12, %v295_v62, %v293_v60  ;;  %v296_v1 = vsel %vm146_vm12, %v293_v60, %v295_v62 }
 0x213   :  { %v299_v3 = vmul.f32 %v619_v16, %v297_v63  ;;  %v446_v13 = vpack.c.bf16 %v296_v1, %v288_v6 }
 0x215   :  { %v303_v10 = vpop.permute.xlu1 %302  ;;  %v444_v11 = vpack.c.bf16 %v299_v3, %v291_v0 }
 0x216   :  { %v305_v15 = vsel %vm155_vm13, %v303_v10, %v301_v4  ;;  %v304_v20 = vsel %vm155_vm13, %v301_v4, %v303_v10 }
 0x217   :  { %v307_v18 = vmul.f32 %v619_v16, %v305_v15  ;;  %445 = vmatprep.subr.bf16.mxu1 %v444_v11 }
 0x218   :  { %447 = vmatpush1.bf16.msra.mxu1 %v446_v13 }
 0x219   :  { %334 = vmatprep.subr.mxu1 %v307_v18 }
 0x21c   :  { %335 = vmatpush1.msra.mxu1 %v304_v20 }
 0x21d   :  { %415 = vmatmul.mubr.msk.f32.vlgmr.msra.gmra.mrb[0].mxu1 %vm167_vm14, %v308_v19  ;;  %v313_v21 = vpop.permute.xlu0 %312 }
 0x2f0   :  { %v384_v22 = vpop.f32.mrb[0].mxu1 }
 0x2f1   :  { %v385_v23 = vadd.f32 %v384_v22, %v313_v21  ;;  %v386_v24 = vpop.f32.mrb[1].mxu1 }
 0x2f2   :  { %v387_v16 = vadd.f32 %v386_v24, %v313_v21 }
 0x2f3   :  { %v389_v25 = vadd.f32 %v385_v23, %v593_v7 }
 0x2f4   :  { %v390_v26 = vadd.f32 %v387_v16, %v600_v9 }
 0x2f5   :  { %391 = vst [vmem:[#allocation5] sm:$0xff] %v389_v25 }
 0x2f6   :  { %392 = vst [vmem:[#allocation5 + $0x8] sm:$0xff] %v390_v26 }
 0x2f7   :  { %514 = shalt.err (!%p511_p12)
}
 0x2f8   :  { %s515_s23 = scalar_lea.hbm %s783_s5, 256 }
 0x2f9   :  { %p516_p13 = scmp.ne.s32.totalorder %s783_s5, %s515_s23  ;;  %p519_p0 = scmp.lt.u32.totalorder %s515_s23, %s783_s5 }
 0x2fb   :  { %p521_p1 = pnand %p519_p0, %p516_p13 }
 0x2fd   :  { %524 = shalt.err (!%p521_p1)
}
 0x2fe   :  { %402 = dma.vmem_to_hbm [thread:$0]  %s400_s20, 256, %s783_s5, [#allocation4]  }
 0x2ff   :  { %527 = dma.done.wait [#allocation4], 256  }
 0x300   :  { %528 = vsyncadd [#allocation4], 4294967040 }
 0x301   :  { %406 = vsyncpa [#allocation3], 1 }
 0x302   :  { %407 = vsyncpa [#allocation4], 1 }

</bundles_post_ra>
